<compile_context>
chip_gen: v7x
topology: tpu7x:2x2x1
jax: 0.10.0
libtpu: 0.0.40
codegen_flags: <defaults>
</compile_context>

<pallas_src>
import math

import jax
import jax.numpy as jnp
from jax.experimental import pallas as pl
from jax.experimental.pallas import tpu as pltpu


def _elu(x):
    # F.elu with alpha=1.0:  x if x > 0 else exp(x) - 1   (overflow-safe)
    return jnp.where(x > 0, x, jnp.exp(jnp.minimum(x, 0.0)) - 1.0)


def _autoenc_kernel(x_ref, w1_ref, w2_ref, wh_ref, b_ref, out_ref):
    # x_ref:  (bm, 768) bf16   pooled + flattened input block
    # w1_ref: (768, 128) bf16, w2_ref: (128, 128) bf16 (zero-padded from 128x64)
    # wh_ref: (4, 128, 128) bf16  [fc_1, fc_2, fc_3, fc_last], zero-padded
    # b_ref:  (8, 128) f32  rows = [b1, b2, bf1, bf2, bf3, bl, 0, 0]
    b = b_ref[...]
    b1, b2 = b[0:1], b[1:2]
    bf1, bf2, bf3, bl = b[2:3], b[3:4], b[4:5], b[5:6]
    bf16 = jnp.bfloat16

    # ---- encoder ----
    h = _elu(x_ref[...])                                                      # (bm, 768) bf16
    h = _elu(jnp.dot(h, w1_ref[...], preferred_element_type=jnp.float32) + b1)    # (bm, 128) f32
    enc = _elu(jnp.dot(h.astype(bf16), w2_ref[...],
                       preferred_element_type=jnp.float32) + b2)              # (bm, 128), cols 64: == 0

    # ---- classifier head (lane-dense 128-wide, zero-padded, bf16 operands) ----
    z1 = _elu(jnp.dot(enc.astype(bf16), wh_ref[0], preferred_element_type=jnp.float32) + bf1)
    z2 = _elu(jnp.dot(z1.astype(bf16), wh_ref[1], preferred_element_type=jnp.float32) + bf2)
    z3 = _elu(jnp.dot(z2.astype(bf16), wh_ref[2], preferred_element_type=jnp.float32) + bf3)
    z = _elu(jnp.dot((z1 + z3).astype(bf16), wh_ref[3],
                     preferred_element_type=jnp.float32) + bl)
    out_ref[...] = z.astype(out_ref.dtype)


def _pad2d(a, rows, cols):
    r, c = a.shape
    return jnp.pad(a, ((0, rows - r), (0, cols - c)))


def pack_params(params):
    """Pack the 12 (in,out)-layout weights/biases into 4 lane-dense slabs."""
    w1, b1, w2, b2, wf1, bf1, wf2, bf2, wf3, bf3, wl, bl = params
    w1_p = w1.astype(jnp.bfloat16)                                # (768, 128)
    w2_p = _pad2d(w2, 128, 128).astype(jnp.bfloat16)              # (128, 128)
    w_head = jnp.stack([
        _pad2d(wf1, 128, 128),                                    # (repr_dim, 32) -> (128, 128)
        _pad2d(wf2, 128, 128),
        _pad2d(wf3, 128, 128),
        _pad2d(wl, 128, 128),                                     # (32, d_out)  -> (128, 128)
    ]).astype(jnp.bfloat16)                                       # (4, 128, 128)
    biases = jnp.zeros((8, 128), jnp.float32)
    for i, bb in enumerate((b1, b2, bf1, bf2, bf3, bl)):
        bb = bb.reshape(-1)
        biases = biases.at[i, : bb.shape[0]].set(bb)
    return w1_p, w2_p, w_head, biases


def autoencoder_classifier(x, params, d_out, block_m=2048):
    """x: (N, C, H, W) float32, NCHW. Returns (N, d_out) float32."""
    N, C, H, W = x.shape
    # AvgPool2d(2,2) then torch .view(-1, C*(H//2)*(W//2)); cast to bf16 so the
    # kernel's dominant HBM stream is half-width.
    pooled = x.reshape(N, C, H // 2, 2, W // 2, 2).mean(axis=(3, 5)).reshape(N, -1)
    pooled = pooled.astype(jnp.bfloat16)
    K = pooled.shape[1]  # 768

    w1_p, w2_p, w_head, biases = pack_params(params)

    # Batch tiling: multiple of 8 sublanes, capped at block_m and at
    # ceil(N/2) rounded up to 8 so there are >=2 grid blocks when N > 8
    # (keeps both v7x TensorCores busy).
    half = -(-N // 2)
    bm = min(block_m, max(8, ((half + 7) // 8) * 8))
    n_blocks = -(-N // bm)   # ragged last block handled (masked) by Pallas

    out = pl.pallas_call(
        _autoenc_kernel,
        out_shape=jax.ShapeDtypeStruct((N, 128), jnp.bfloat16),
        grid=(n_blocks,),
        in_specs=[
            pl.BlockSpec((bm, K), lambda i: (i, 0)),            # pooled activations (bf16)
            pl.BlockSpec((K, 128), lambda i: (0, 0)),           # w1 (bf16)
            pl.BlockSpec((128, 128), lambda i: (0, 0)),         # w2 (bf16, padded)
            pl.BlockSpec((4, 128, 128), lambda i: (0, 0, 0)),   # head weights (bf16, padded)
            pl.BlockSpec((8, 128), lambda i: (0, 0)),           # packed biases (f32)
        ],
        out_specs=pl.BlockSpec((bm, 128), lambda i: (i, 0)),    # lane-dense bf16 output
        compiler_params=pltpu.CompilerParams(
            dimension_semantics=("parallel",),
            vmem_limit_bytes=40 * 1024 * 1024),
    )(pooled, w1_p, w2_p, w_head, biases)
    return out[:, :d_out].astype(jnp.float32)


def _init_linear(key, fan_in, fan_out):
    # PyTorch nn.Linear default: U(-1/sqrt(fan_in), 1/sqrt(fan_in)) for W and b.
    kw, kb = jax.random.split(key)
    bound = 1.0 / math.sqrt(fan_in)
    w = jax.random.uniform(kw, (fan_in, fan_out), jnp.float32, -bound, bound)
    b = jax.random.uniform(kb, (1, fan_out), jnp.float32, -bound, bound)
    return w, b


def _reference(x, params):
    # Mirrors the kernel math (bf16 operands on all matmuls, f32 accumulation,
    # bf16 input ELU, bf16 output). Deliberate precision trade vs fp32 PyTorch.
    w1, b1, w2, b2, wf1, bf1, wf2, bf2, wf3, bf3, wl, bl = params
    N, C, H, W = x.shape
    bf16 = jnp.bfloat16
    pooled = x.reshape(N, C, H // 2, 2, W // 2, 2).mean(axis=(3, 5)).reshape(N, -1)
    h = _elu(pooled.astype(bf16))
    h = _elu(jnp.dot(h, w1.astype(bf16), preferred_element_type=jnp.float32) + b1)
    enc = _elu(jnp.dot(h.astype(bf16), w2.astype(bf16),
                       preferred_element_type=jnp.float32) + b2)
    z1 = _elu(jnp.dot(enc.astype(bf16), wf1.astype(bf16),
                      preferred_element_type=jnp.float32) + bf1)
    z2 = _elu(jnp.dot(z1.astype(bf16), wf2.astype(bf16),
                      preferred_element_type=jnp.float32) + bf2)
    z3 = _elu(jnp.dot(z2.astype(bf16), wf3.astype(bf16),
                      preferred_element_type=jnp.float32) + bf3)
    z = _elu(jnp.dot((z1 + z3).astype(bf16), wl.astype(bf16),
                     preferred_element_type=jnp.float32) + bl)
    return z.astype(bf16).astype(jnp.float32)


if __name__ == "__main__":
    key = jax.random.PRNGKey(0)
    kx, k1, k2, k3, k4, k5, k6 = jax.random.split(key, 7)

    # Shapes implied by the module: pool(32x32)->16x16, view(-1, 3*16*16=768),
    # encoder output dim 64 -> repr_dim = 64.
    N, C, H, W = 2, 3, 32, 32
    repr_dim, d_out, n_neurons = 64, 10, 32

    x = jax.random.normal(kx, (N, C, H, W), jnp.float32)

    w1, b1 = _init_linear(k1, 768, 128)                 # fc1
    w2, b2 = _init_linear(k2, 128, 64)                  # fc2
    wf1, bf1 = _init_linear(k3, repr_dim, n_neurons)    # fc_1
    wf2, bf2 = _init_linear(k4, n_neurons, n_neurons)   # fc_2
    wf3, bf3 = _init_linear(k5, n_neurons, n_neurons)   # fc_3
    wl, bl = _init_linear(k6, n_neurons, d_out)         # fc_last

    params = (w1, b1, w2, b2, wf1, bf1, wf2, bf2, wf3, bf3, wl, bl)

    out = autoencoder_classifier(x, params, d_out)
    out = jax.block_until_ready(out)

    ref = _reference(x, params)
    assert out.shape == (N, d_out)
    assert jnp.allclose(out, ref, atol=3e-3, rtol=3e-3), "mismatch vs JAX reference"

    print("KERNEL_OK")
</pallas_src>

<mosaic_0001>
module attributes {stable_mosaic.version = 11 : i64} {
  func.func @_autoenc_kernel(%arg0: i32, %arg1: memref<8x768xbf16, #tpu.memory_space<vmem>>, %arg2: memref<768x128xbf16, #tpu.memory_space<vmem>>, %arg3: memref<128x128xbf16, #tpu.memory_space<vmem>>, %arg4: memref<4x128x128xbf16, #tpu.memory_space<vmem>>, %arg5: memref<8x128xf32, #tpu.memory_space<vmem>>, %arg6: memref<8x128xbf16, #tpu.memory_space<vmem>>) attributes {dimension_semantics = [#tpu.dimension_semantics<parallel>], iteration_bounds = array<i64: 1>, scalar_prefetch = 0 : i64, scratch_operands = 0 : i64, tpu.core_type = #tpu.core_type<tc>, window_params = [{transform_indices = @transform_0, window_bounds = array<i64: 8, 768>}, {pipeline_mode = #tpu.pipeline_mode<synchronous>, transform_indices = @transform_1, window_bounds = array<i64: 768, 128>}, {pipeline_mode = #tpu.pipeline_mode<synchronous>, transform_indices = @transform_2, window_bounds = array<i64: 128, 128>}, {pipeline_mode = #tpu.pipeline_mode<synchronous>, transform_indices = @transform_3, window_bounds = array<i64: 4, 128, 128>}, {pipeline_mode = #tpu.pipeline_mode<synchronous>, transform_indices = @transform_4, window_bounds = array<i64: 8, 128>}, {transform_indices = @transform_5, window_bounds = array<i64: 8, 128>}]} {
    %c0 = arith.constant 0 : index
    %c0_0 = arith.constant 0 : index
    %0 = vector.load %arg5[%c0, %c0_0] : memref<8x128xf32, #tpu.memory_space<vmem>>, vector<8x128xf32>
    %1 = vector.extract_strided_slice %0 {offsets = [0, 0], sizes = [1, 128], strides = [1, 1]} : vector<8x128xf32> to vector<1x128xf32>
    %2 = vector.extract_strided_slice %0 {offsets = [1, 0], sizes = [1, 128], strides = [1, 1]} : vector<8x128xf32> to vector<1x128xf32>
    %3 = vector.extract_strided_slice %0 {offsets = [2, 0], sizes = [1, 128], strides = [1, 1]} : vector<8x128xf32> to vector<1x128xf32>
    %4 = vector.extract_strided_slice %0 {offsets = [3, 0], sizes = [1, 128], strides = [1, 1]} : vector<8x128xf32> to vector<1x128xf32>
    %5 = vector.extract_strided_slice %0 {offsets = [4, 0], sizes = [1, 128], strides = [1, 1]} : vector<8x128xf32> to vector<1x128xf32>
    %6 = vector.extract_strided_slice %0 {offsets = [5, 0], sizes = [1, 128], strides = [1, 1]} : vector<8x128xf32> to vector<1x128xf32>
    %c0_1 = arith.constant 0 : index
    %c0_2 = arith.constant 0 : index
    %7 = vector.load %arg1[%c0_1, %c0_2] : memref<8x768xbf16, #tpu.memory_space<vmem>>, vector<8x768xbf16>
    %cst = arith.constant 0.000000e+00 : bf16
    %8 = vector.broadcast %cst : bf16 to vector<8x768xbf16>
    %9 = arith.cmpf ogt, %7, %8 : vector<8x768xbf16>
    %cst_3 = arith.constant 0.000000e+00 : bf16
    %10 = vector.broadcast %cst_3 : bf16 to vector<8x768xbf16>
    %11 = arith.minimumf %7, %10 : vector<8x768xbf16>
    %12 = math.exp %11 : vector<8x768xbf16>
    %cst_4 = arith.constant 1.000000e+00 : bf16
    %13 = vector.broadcast %cst_4 : bf16 to vector<8x768xbf16>
    %14 = arith.subf %12, %13 : vector<8x768xbf16>
    %15 = arith.select %9, %7, %14 : vector<8x768xi1>, vector<8x768xbf16>
    %c0_5 = arith.constant 0 : index
    %c0_6 = arith.constant 0 : index
    %16 = vector.load %arg2[%c0_5, %c0_6] : memref<768x128xbf16, #tpu.memory_space<vmem>>, vector<768x128xbf16>
    %cst_7 = arith.constant dense<0.000000e+00> : vector<8x128xf32>
    %17 = tpu.matmul %15, %16, %cst_7 {dimension_numbers = #tpu.dot_dimension_numbers<[1], [0], [0], [1], [0, 0, 1, 1], [], []>} : vector<8x768xbf16>, vector<768x128xbf16>, vector<8x128xf32> -> vector<8x128xf32>
    %18 = vector.broadcast %1 : vector<1x128xf32> to vector<8x128xf32>
    %19 = arith.addf %17, %18 : vector<8x128xf32>
    %cst_8 = arith.constant 0.000000e+00 : f32
    %20 = vector.broadcast %cst_8 : f32 to vector<8x128xf32>
    %21 = arith.cmpf ogt, %19, %20 : vector<8x128xf32>
    %cst_9 = arith.constant 0.000000e+00 : f32
    %22 = vector.broadcast %cst_9 : f32 to vector<8x128xf32>
    %23 = arith.minimumf %19, %22 : vector<8x128xf32>
    %24 = math.exp %23 : vector<8x128xf32>
    %cst_10 = arith.constant 1.000000e+00 : f32
    %25 = vector.broadcast %cst_10 : f32 to vector<8x128xf32>
    %26 = arith.subf %24, %25 : vector<8x128xf32>
    %27 = arith.select %21, %19, %26 : vector<8x128xi1>, vector<8x128xf32>
    %28 = arith.truncf %27 : vector<8x128xf32> to vector<8x128xbf16>
    %c0_11 = arith.constant 0 : index
    %c0_12 = arith.constant 0 : index
    %29 = vector.load %arg3[%c0_11, %c0_12] : memref<128x128xbf16, #tpu.memory_space<vmem>>, vector<128x128xbf16>
    %cst_13 = arith.constant dense<0.000000e+00> : vector<8x128xf32>
    %30 = tpu.matmul %28, %29, %cst_13 {dimension_numbers = #tpu.dot_dimension_numbers<[1], [0], [0], [1], [0, 0, 1, 1], [], []>} : vector<8x128xbf16>, vector<128x128xbf16>, vector<8x128xf32> -> vector<8x128xf32>
    %31 = vector.broadcast %2 : vector<1x128xf32> to vector<8x128xf32>
    %32 = arith.addf %30, %31 : vector<8x128xf32>
    %cst_14 = arith.constant 0.000000e+00 : f32
    %33 = vector.broadcast %cst_14 : f32 to vector<8x128xf32>
    %34 = arith.cmpf ogt, %32, %33 : vector<8x128xf32>
    %cst_15 = arith.constant 0.000000e+00 : f32
    %35 = vector.broadcast %cst_15 : f32 to vector<8x128xf32>
    %36 = arith.minimumf %32, %35 : vector<8x128xf32>
    %37 = math.exp %36 : vector<8x128xf32>
    %cst_16 = arith.constant 1.000000e+00 : f32
    %38 = vector.broadcast %cst_16 : f32 to vector<8x128xf32>
    %39 = arith.subf %37, %38 : vector<8x128xf32>
    %40 = arith.select %34, %32, %39 : vector<8x128xi1>, vector<8x128xf32>
    %41 = arith.truncf %40 : vector<8x128xf32> to vector<8x128xbf16>
    %c0_17 = arith.constant 0 : index
    %c0_18 = arith.constant 0 : index
    %c0_19 = arith.constant 0 : index
    %42 = vector.load %arg4[%c0_17, %c0_18, %c0_19] : memref<4x128x128xbf16, #tpu.memory_space<vmem>>, vector<1x128x128xbf16>
    %43 = vector.shape_cast %42 : vector<1x128x128xbf16> to vector<128x128xbf16>
    %cst_20 = arith.constant dense<0.000000e+00> : vector<8x128xf32>
    %44 = tpu.matmul %41, %43, %cst_20 {dimension_numbers = #tpu.dot_dimension_numbers<[1], [0], [0], [1], [0, 0, 1, 1], [], []>} : vector<8x128xbf16>, vector<128x128xbf16>, vector<8x128xf32> -> vector<8x128xf32>
    %45 = vector.broadcast %3 : vector<1x128xf32> to vector<8x128xf32>
    %46 = arith.addf %44, %45 : vector<8x128xf32>
    %cst_21 = arith.constant 0.000000e+00 : f32
    %47 = vector.broadcast %cst_21 : f32 to vector<8x128xf32>
    %48 = arith.cmpf ogt, %46, %47 : vector<8x128xf32>
    %cst_22 = arith.constant 0.000000e+00 : f32
    %49 = vector.broadcast %cst_22 : f32 to vector<8x128xf32>
    %50 = arith.minimumf %46, %49 : vector<8x128xf32>
    %51 = math.exp %50 : vector<8x128xf32>
    %cst_23 = arith.constant 1.000000e+00 : f32
    %52 = vector.broadcast %cst_23 : f32 to vector<8x128xf32>
    %53 = arith.subf %51, %52 : vector<8x128xf32>
    %54 = arith.select %48, %46, %53 : vector<8x128xi1>, vector<8x128xf32>
    %55 = arith.truncf %54 : vector<8x128xf32> to vector<8x128xbf16>
    %c1 = arith.constant 1 : index
    %c0_24 = arith.constant 0 : index
    %c0_25 = arith.constant 0 : index
    %56 = vector.load %arg4[%c1, %c0_24, %c0_25] : memref<4x128x128xbf16, #tpu.memory_space<vmem>>, vector<1x128x128xbf16>
    %57 = vector.shape_cast %56 : vector<1x128x128xbf16> to vector<128x128xbf16>
    %cst_26 = arith.constant dense<0.000000e+00> : vector<8x128xf32>
    %58 = tpu.matmul %55, %57, %cst_26 {dimension_numbers = #tpu.dot_dimension_numbers<[1], [0], [0], [1], [0, 0, 1, 1], [], []>} : vector<8x128xbf16>, vector<128x128xbf16>, vector<8x128xf32> -> vector<8x128xf32>
    %59 = vector.broadcast %4 : vector<1x128xf32> to vector<8x128xf32>
    %60 = arith.addf %58, %59 : vector<8x128xf32>
    %cst_27 = arith.constant 0.000000e+00 : f32
    %61 = vector.broadcast %cst_27 : f32 to vector<8x128xf32>
    %62 = arith.cmpf ogt, %60, %61 : vector<8x128xf32>
    %cst_28 = arith.constant 0.000000e+00 : f32
    %63 = vector.broadcast %cst_28 : f32 to vector<8x128xf32>
    %64 = arith.minimumf %60, %63 : vector<8x128xf32>
    %65 = math.exp %64 : vector<8x128xf32>
    %cst_29 = arith.constant 1.000000e+00 : f32
    %66 = vector.broadcast %cst_29 : f32 to vector<8x128xf32>
    %67 = arith.subf %65, %66 : vector<8x128xf32>
    %68 = arith.select %62, %60, %67 : vector<8x128xi1>, vector<8x128xf32>
    %69 = arith.truncf %68 : vector<8x128xf32> to vector<8x128xbf16>
    %c2 = arith.constant 2 : index
    %c0_30 = arith.constant 0 : index
    %c0_31 = arith.constant 0 : index
    %70 = vector.load %arg4[%c2, %c0_30, %c0_31] : memref<4x128x128xbf16, #tpu.memory_space<vmem>>, vector<1x128x128xbf16>
    %71 = vector.shape_cast %70 : vector<1x128x128xbf16> to vector<128x128xbf16>
    %cst_32 = arith.constant dense<0.000000e+00> : vector<8x128xf32>
    %72 = tpu.matmul %69, %71, %cst_32 {dimension_numbers = #tpu.dot_dimension_numbers<[1], [0], [0], [1], [0, 0, 1, 1], [], []>} : vector<8x128xbf16>, vector<128x128xbf16>, vector<8x128xf32> -> vector<8x128xf32>
    %73 = vector.broadcast %5 : vector<1x128xf32> to vector<8x128xf32>
    %74 = arith.addf %72, %73 : vector<8x128xf32>
    %cst_33 = arith.constant 0.000000e+00 : f32
    %75 = vector.broadcast %cst_33 : f32 to vector<8x128xf32>
    %76 = arith.cmpf ogt, %74, %75 : vector<8x128xf32>
    %cst_34 = arith.constant 0.000000e+00 : f32
    %77 = vector.broadcast %cst_34 : f32 to vector<8x128xf32>
    %78 = arith.minimumf %74, %77 : vector<8x128xf32>
    %79 = math.exp %78 : vector<8x128xf32>
    %cst_35 = arith.constant 1.000000e+00 : f32
    %80 = vector.broadcast %cst_35 : f32 to vector<8x128xf32>
    %81 = arith.subf %79, %80 : vector<8x128xf32>
    %82 = arith.select %76, %74, %81 : vector<8x128xi1>, vector<8x128xf32>
    %83 = arith.addf %54, %82 : vector<8x128xf32>
    %84 = arith.truncf %83 : vector<8x128xf32> to vector<8x128xbf16>
    %c3 = arith.constant 3 : index
    %c0_36 = arith.constant 0 : index
    %c0_37 = arith.constant 0 : index
    %85 = vector.load %arg4[%c3, %c0_36, %c0_37] : memref<4x128x128xbf16, #tpu.memory_space<vmem>>, vector<1x128x128xbf16>
    %86 = vector.shape_cast %85 : vector<1x128x128xbf16> to vector<128x128xbf16>
    %cst_38 = arith.constant dense<0.000000e+00> : vector<8x128xf32>
    %87 = tpu.matmul %84, %86, %cst_38 {dimension_numbers = #tpu.dot_dimension_numbers<[1], [0], [0], [1], [0, 0, 1, 1], [], []>} : vector<8x128xbf16>, vector<128x128xbf16>, vector<8x128xf32> -> vector<8x128xf32>
    %88 = vector.broadcast %6 : vector<1x128xf32> to vector<8x128xf32>
    %89 = arith.addf %87, %88 : vector<8x128xf32>
    %cst_39 = arith.constant 0.000000e+00 : f32
    %90 = vector.broadcast %cst_39 : f32 to vector<8x128xf32>
    %91 = arith.cmpf ogt, %89, %90 : vector<8x128xf32>
    %cst_40 = arith.constant 0.000000e+00 : f32
    %92 = vector.broadcast %cst_40 : f32 to vector<8x128xf32>
    %93 = arith.minimumf %89, %92 : vector<8x128xf32>
    %94 = math.exp %93 : vector<8x128xf32>
    %cst_41 = arith.constant 1.000000e+00 : f32
    %95 = vector.broadcast %cst_41 : f32 to vector<8x128xf32>
    %96 = arith.subf %94, %95 : vector<8x128xf32>
    %97 = arith.select %91, %89, %96 : vector<8x128xi1>, vector<8x128xf32>
    %98 = arith.truncf %97 : vector<8x128xf32> to vector<8x128xbf16>
    %c0_42 = arith.constant 0 : index
    %c0_43 = arith.constant 0 : index
    %99 = vector.load %arg6[%c0_42, %c0_43] : memref<8x128xbf16, #tpu.memory_space<vmem>>, vector<8x128xbf16>
    tpu.vector_store %arg6[%c0_42, %c0_43], %98 {strides = array<i32>} : memref<8x128xbf16, #tpu.memory_space<vmem>>, vector<8x128xbf16>,
    return
  }
  func.func @transform_0(%arg0: i32) -> (i32, i32) {
    %c0_i32 = arith.constant 0 : i32
    %c0_i32_0 = arith.constant 0 : i32
    return %arg0, %c0_i32 : i32, i32
  }
  func.func @transform_1(%arg0: i32) -> (i32, i32) {
    %c0_i32 = arith.constant 0 : i32
    %c0_i32_0 = arith.constant 0 : i32
    %c0_i32_1 = arith.constant 0 : i32
    return %c0_i32, %c0_i32_0 : i32, i32
  }
  func.func @transform_2(%arg0: i32) -> (i32, i32) {
    %c0_i32 = arith.constant 0 : i32
    %c0_i32_0 = arith.constant 0 : i32
    %c0_i32_1 = arith.constant 0 : i32
    return %c0_i32, %c0_i32_0 : i32, i32
  }
  func.func @transform_3(%arg0: i32) -> (i32, i32, i32) {
    %c0_i32 = arith.constant 0 : i32
    %c0_i32_0 = arith.constant 0 : i32
    %c0_i32_1 = arith.constant 0 : i32
    %c0_i32_2 = arith.constant 0 : i32
    return %c0_i32, %c0_i32_0, %c0_i32_1 : i32, i32, i32
  }
  func.func @transform_4(%arg0: i32) -> (i32, i32) {
    %c0_i32 = arith.constant 0 : i32
    %c0_i32_0 = arith.constant 0 : i32
    %c0_i32_1 = arith.constant 0 : i32
    return %c0_i32, %c0_i32_0 : i32, i32
  }
  func.func @transform_5(%arg0: i32) -> (i32, i32) {
    %c0_i32 = arith.constant 0 : i32
    %c0_i32_0 = arith.constant 0 : i32
    return %arg0, %c0_i32 : i32, i32
  }
}

</mosaic_0001>

<bundles_post_ra>
// kernel: tpu_custom_call.1
= control target key start
LH: loop header
LB: loop body
LE: loop exit
PB: predicated region body
PF: predicated region fallthrough
CT: control target
= control target key end

     0   :  { %10 = vsyncpa [#allocation3], 0  ;;  %s2092_s0 = inlined_call_operand.hbm [shape: bf16[2,768], index: 0, kind: input, shape index: {}]   ;;  %s2093_s1 = inlined_call_operand.hbm [shape: bf16[768,128], index: 1, kind: input, shape index: {}]   ;;  %s2094_s2 = inlined_call_operand.hbm [shape: bf16[128,128], index: 2, kind: input, shape index: {}]   ;;  %s2095_s3 = inlined_call_operand.hbm [shape: bf16[4,128,128], index: 3, kind: input, shape index: {}]   ;;  %s2096_s4 = inlined_call_operand.vmem [shape: f32[8,128], index: 4, kind: input, shape index: {}]   ;;  %s2097_s5 = inlined_call_operand.hbm [shape: bf16[2,128], index: 5, kind: output, shape index: {}]  }
   0x1   :  { %11 = vsyncpa [#allocation6], 0 }
   0x2   :  { %12 = vsyncpa [#allocation9], 0 }
   0x3   :  { %13 = vsyncpa [#allocation4], 0 }
   0x4   :  { %18 = vsyncadd [#allocation3], 288  ;;  %s1882_s18 = smov [#allocation5]   ;;  %s1764_s22 = scalar_lea.hbm %s2093_s1, 6144 }
   0x5   :  { %s31_s19 = sshll.u32 %s1882_s18, 4  ;;  %p1765_p0 = scmp.ne.s32.totalorder %s2093_s1, %s1764_s22  ;;  %s32_s19 = int_to_ptr.vmem [resolvable:$true] %s31_s19 }
   0x6   :  { %p1768_p1 = scmp.lt.u32.totalorder %s1764_s22, %s2093_s1 }
   0x8   :  { %p1770_p2 = pnand %p1768_p1, %p1765_p0 }
   0xa   :  { %1773 = shalt.err (!%p1770_p2)
}
   0xb   :  { %s1774_s27 = scalar_lea.vmem %s32_s19, 6144  ;;  %p1779_p4 = scmp.lt.s32.totalorder %s32_s19, %s32_s19 }
   0xc   :  { %p1775_p3 = scmp.ne.s32.totalorder %s32_s19, %s1774_s27  ;;  %p1780_p5 = scmp.lt.s32.totalorder %s1774_s27, %s1774_s27 }
   0xe   :  { %p1781_p6 = por %p1780_p5, %p1779_p4 }
  0x10   :  { %p1782_p7 = pnand %p1781_p6, %p1775_p3 }
  0x12   :  { %1785 = shalt.err (!%p1782_p7)
}
  0x13   :  { %s1883_s28 = smov 64   ;;  %s1884_s29 = smov 4  }
  0x14   :  { %37 = dma.hbm_to_vmem [thread:$0]  %s2093_s1, 6144, %s32_s19, [#allocation6], %s1883_s28, %s1883_s28, %s1884_s29  }
  0x15   :  { %s1885_s7 = smov [#allocation2]   ;;  %s1786_s11 = scalar_lea.hbm %s2092_s0, 96 }
  0x16   :  { %s19_s8 = sshll.u32 %s1885_s7, 4  ;;  %p1787_p8 = scmp.ne.s32.totalorder %s2092_s0, %s1786_s11  ;;  %s20_s8 = int_to_ptr.vmem [resolvable:$true] %s19_s8 }
  0x17   :  { %p1790_p9 = scmp.lt.u32.totalorder %s1786_s11, %s2092_s0 }
  0x19   :  { %p1792_p10 = pnand %p1790_p9, %p1787_p8 }
  0x1b   :  { %1795 = shalt.err (!%p1792_p10)
}
  0x1c   :  { %s1796_s16 = scalar_lea.vmem %s20_s8, 96  ;;  %s1800_s1 = scalar_lea.vmem %s20_s8, 384 }
  0x1d   :  { %p1797_p11 = scmp.ne.s32.totalorder %s20_s8, %s1796_s16  ;;  %p1801_p12 = scmp.lt.s32.totalorder %s20_s8, %s20_s8 }
  0x1e   :  { %p1802_p13 = scmp.lt.s32.totalorder %s1800_s1, %s1796_s16 }
  0x20   :  { %p1803_p0 = por %p1802_p13, %p1801_p12 }
  0x22   :  { %p1804_p1 = pnand %p1803_p0, %p1797_p11 }
  0x24   :  { %1807 = shalt.err (!%p1804_p1)
}
  0x25   :  { %s1886_s17 = smov 96   ;;  %s1887_s18 = smov 6  }
  0x26   :  { %25 = dma.hbm_to_vmem [thread:$0]  %s2092_s0, 96, %s20_s8, [#allocation3], %s1886_s17, %s1886_s17, %s1887_s18  }
  0x27   :  { %s1888_s21 = smov [#allocation7]   ;;  %s1889_s23 = smov [#allocation8]  }
  0x28   :  { %s43_s22 = sshll.u32 %s1888_s21, 4  ;;  %s55_s24 = sshll.u32 %s1889_s23, 4  ;;  %s44_s22 = int_to_ptr.vmem [resolvable:$true] %s43_s22  ;;  %s1955_s24 = int_to_ptr.vmem [resolvable:$true] %s55_s24 }
  0x29   :  { %s1808_s27 = scalar_lea.hbm %s2094_s2, 1024 }
  0x2a   :  { %p1809_p2 = scmp.ne.s32.totalorder %s2094_s2, %s1808_s27  ;;  %p1812_p3 = scmp.lt.u32.totalorder %s1808_s27, %s2094_s2 }
  0x2c   :  { %p1814_p4 = pnand %p1812_p3, %p1809_p2 }
  0x2e   :  { %1817 = shalt.err (!%p1814_p4)
}
  0x2f   :  { %s1818_s0 = scalar_lea.vmem %s44_s22, 1024  ;;  %p1823_p6 = scmp.lt.s32.totalorder %s44_s22, %s44_s22 }
  0x30   :  { %p1819_p5 = scmp.ne.s32.totalorder %s44_s22, %s1818_s0  ;;  %p1824_p7 = scmp.lt.s32.totalorder %s1818_s0, %s1818_s0 }
  0x32   :  { %p1825_p8 = por %p1824_p7, %p1823_p6 }
  0x34   :  { %p1826_p9 = pnand %p1825_p8, %p1819_p5 }
  0x36   :  { %1829 = shalt.err (!%p1826_p9)
}
  0x37   :  { %49 = dma.hbm_to_vmem [thread:$0]  %s2094_s2, 1024, %s44_s22, [#allocation6], %s1883_s28, %s1883_s28, %s1884_s29  }
  0x38   :  { %s1830_s13 = scalar_lea.hbm %s2095_s3, 4096 }
  0x39   :  { %p1831_p10 = scmp.ne.s32.totalorder %s2095_s3, %s1830_s13  ;;  %p1834_p11 = scmp.lt.u32.totalorder %s1830_s13, %s2095_s3 }
  0x3b   :  { %p1836_p12 = pnand %p1834_p11, %p1831_p10 }
  0x3d   :  { %1839 = shalt.err (!%p1836_p12)
}
  0x3e   :  { %s1840_s17 = scalar_lea.vmem %s1955_s24, 4096  ;;  %p1845_p0 = scmp.lt.s32.totalorder %s1955_s24, %s1955_s24 }
  0x3f   :  { %p1841_p13 = scmp.ne.s32.totalorder %s1955_s24, %s1840_s17  ;;  %p1846_p1 = scmp.lt.s32.totalorder %s1840_s17, %s1840_s17 }
  0x41   :  { %p1847_p2 = por %p1846_p1, %p1845_p0 }
  0x43   :  { %p1848_p3 = pnand %p1847_p2, %p1841_p13 }
  0x45   :  { %1851 = shalt.err (!%p1848_p3)
}
  0x46   :  { %61 = dma.hbm_to_vmem [thread:$0]  %s2095_s3, 4096, %s1955_s24, [#allocation9], %s1883_s28, %s1883_s28, %s1884_s29  }
  0x47   :  { %1874 = dma.done.wait [#allocation3], 384  }
  0x48   :  { %1875 = vsyncadd [#allocation3], 4294966912 }
  0x49   :  { %1876 = dma.done.wait [#allocation6], 7168  }
  0x4a   :  { %1877 = vsyncadd [#allocation6], 4294960128 }
  0x4b   :  { %1878 = dma.done.wait [#allocation9], 4096  }
  0x4c   :  { %1879 = vsyncadd [#allocation9], 4294963200  ;;  %v1656_v0 = vld [vmem:[#allocation5 + $0x40] sm:$0xff]   ;;  %v1660_v4 = vld [vmem:[#allocation5 + $0x48] sm:$0xff]   ;;  %v1890_v35 = vmov 0   ;;  %v207_v46 = vlaneseq  ;;  %vm1894_vm4 = vmmov 0  }
  0x4d   :  { %v1657_v1 = vld [vmem:[#allocation5] sm:$0xff]   ;;  %1429 = vmatprep.subr.bf16.mxu0 %v1656_v0  ;;  %v1661_v5 = vld [vmem:[#allocation5 + $0x8] sm:$0xff]   ;;  %v1664_v8 = vld [vmem:[#allocation5 + $0x50] sm:$0xff]   ;;  %v1891_v47 = vmov 1966171168  }
  0x4e   :  { %v1658_v2 = vld [vmem:[#allocation5 + $0xc0] sm:$0xff]   ;;  %1430 = vmatpush3.bf16.msra.mxu0 %v1657_v1  ;;  %v1662_v6 = vld [vmem:[#allocation5 + $0xc8] sm:$0xff]   ;;  %v1665_v9 = vld [vmem:[#allocation5 + $0x10] sm:$0xff]   ;;  %v220_v48 = vunpack.c.l.s4 %v1891_v47  ;;  %v1992_v49 = vshrl.u32 %v207_v46, 7  ;;  %v1892_v53 = vmov 1065369472  }
  0x4f   :  { %v1659_v3 = vld [vmem:[#allocation5 + $0x80] sm:$0xff]   ;;  %1451 = vmatprep.subr.bf16.mxu1 %v1658_v2  ;;  %1431 = vmatprep.subr.bf16.mxu0 %v1660_v4  ;;  %v1663_v7 = vld [vmem:[#allocation5 + $0x88] sm:$0xff]   ;;  %v1666_v10 = vld [vmem:[#allocation5 + $0xd0] sm:$0xff]  }
  0x50   :  { %1452 = vmatpush3.bf16.msra.mxu1 %v1659_v3  ;;  %v1667_v11 = vld [vmem:[#allocation5 + $0x90] sm:$0xff]   ;;  %v1668_v12 = vld [vmem:[#allocation5 + $0x58] sm:$0xff]   ;;  %v1672_v16 = vld [vmem:[#allocation5 + $0x60] sm:$0xff]   ;;  %v221_v50 = vunpack.c.0.s8 %v220_v48 }
  0x51   :  { %1453 = vmatprep.subr.bf16.mxu1 %v1662_v6  ;;  %v1669_v13 = vld [vmem:[#allocation5 + $0x18] sm:$0xff]   ;;  %v1673_v17 = vld [vmem:[#allocation5 + $0x20] sm:$0xff]   ;;  %v1676_v20 = vld [vmem:[#allocation5 + $0x68] sm:$0xff]  }
  0x52   :  { %1432 = vmatpush3.bf16.msra.mxu0 %v1661_v5  ;;  %v1670_v14 = vld [vmem:[#allocation5 + $0xd8] sm:$0xff]   ;;  %v1674_v18 = vld [vmem:[#allocation5 + $0xe0] sm:$0xff]   ;;  %v1677_v21 = vld [vmem:[#allocation5 + $0x28] sm:$0xff]   ;;  %v1995_v60 = vsub.s32 %v221_v50, %v1992_v49 }
  0x53   :  { %1433 = vmatprep.subr.bf16.mxu0 %v1664_v8  ;;  %v1671_v15 = vld [vmem:[#allocation5 + $0x98] sm:$0xff]   ;;  %v1675_v19 = vld [vmem:[#allocation5 + $0xa0] sm:$0xff]   ;;  %v1678_v22 = vld [vmem:[#allocation5 + $0xe8] sm:$0xff]  }
  0x54   :  { %1454 = vmatpush3.bf16.msra.mxu1 %v1663_v7  ;;  %v1679_v23 = vld [vmem:[#allocation5 + $0xa8] sm:$0xff]   ;;  %v1680_v24 = vld [vmem:[#allocation5 + $0x70] sm:$0xff]   ;;  %v1684_v28 = vld [vmem:[#allocation5 + $0x78] sm:$0xff]  }
  0x55   :  { %1455 = vmatprep.subr.bf16.mxu1 %v1666_v10  ;;  %v1681_v25 = vld [vmem:[#allocation5 + $0x30] sm:$0xff]   ;;  %v1685_v29 = vld [vmem:[#allocation5 + $0x38] sm:$0xff]   ;;  %v79_v31 = vld [vmem:[#allocation2] sm:$0x3f] }
  0x56   :  { %1434 = vmatpush3.bf16.msra.mxu0 %v1665_v9  ;;  %v1682_v26 = vld [vmem:[#allocation5 + $0xf0] sm:$0xff]   ;;  %v1686_v30 = vld [vmem:[#allocation5 + $0xf8] sm:$0xff]   ;;  %v87_v36 = vmin.bf16 %v1890_v35, %v79_v31  ;;  %v1688_v41 = vld [vmem:[#allocation5 + $0x140] sm:$0xff]   ;;  %vm83_vm0 = vcmp.gt.bf16.partialorder %v79_v31, 0 }
  0x57   :  { %1435 = vmatprep.subr.bf16.mxu0 %v1668_v12  ;;  %v1683_v27 = vld [vmem:[#allocation5 + $0xb0] sm:$0xff]   ;;  %v82_v34 = vld [vmem:[#allocation2 + $0x12] sm:$0x3f]  ;;  %v2025_v46 = vld [vmem:[%s2096_s4] sm:$0xff] }
  0x58   :  { %1456 = vmatpush3.bf16.msra.mxu1 %v1667_v11  ;;  %v80_v32 = vld [vmem:[#allocation2 + $0x6] sm:$0x3f]  ;;  %v81_v33 = vld [vmem:[#allocation2 + $0xc] sm:$0x3f]  ;;  %v90_v40 = vmin.bf16 %v1890_v35, %v82_v34  ;;  %v92_v42 = vmul.bf16 1069105081, %v87_v36 }
  0x59   :  { %1457 = vmatprep.subr.bf16.mxu1 %v1670_v14  ;;  %v1687_v37 = vld [vmem:[#allocation5 + $0xb8] sm:$0xff]   ;;  %v88_v38 = vmin.bf16 %v1890_v35, %v80_v32  ;;  %v89_v39 = vmin.bf16 %v1890_v35, %v81_v33  ;;  %vm84_vm1 = vcmp.gt.bf16.partialorder %v80_v32, 0  ;;  %vm85_vm2 = vcmp.gt.bf16.partialorder %v81_v33, 0  ;;  %v1689_v11 = vld [vmem:[#allocation5 + $0x100] sm:$0xff]   ;;  %v1705_v36 = vld [vmem:[#allocation7 + $0x8] sm:$0xff]  }
  0x5a   :  { %1436 = vmatpush3.bf16.msra.mxu0 %v1669_v13  ;;  %v101_v45 = vmul.bf16 1069105081, %v90_v40  ;;  %1744 = vpow.bf16 %v92_v42  ;;  %vm86_vm3 = vcmp.gt.bf16.partialorder %v82_v34, 0  ;;  %v1690_v13 = vld [vmem:[#allocation5 + $0x148] sm:$0xff]   ;;  %v1893_v35 = vmov 0.0   ;;  %v1711_v42 = vld [vmem:[#allocation7 + $0x38] sm:$0xff]  }
  0x5b   :  { %1437 = vmatprep.subr.bf16.mxu0 %v1672_v16  ;;  %v95_v43 = vmul.bf16 1069105081, %v88_v38  ;;  %v98_v44 = vmul.bf16 1069105081, %v89_v39  ;;  %v1707_v38 = vld [vmem:[#allocation7 + $0x18] sm:$0xff]   ;;  %v1708_v39 = vld [vmem:[#allocation7 + $0x20] sm:$0xff]  }
  0x5c   :  { %1458 = vmatpush3.bf16.msra.mxu1 %v1671_v15  ;;  %v1709_v40 = vld [vmem:[#allocation7 + $0x28] sm:$0xff]  }
  0x5d   :  { %1459 = vmatprep.subr.bf16.mxu1 %v1674_v18  ;;  %1746 = vpow.bf16 %v95_v43  ;;  %v1691_v18 = vld [vmem:[#allocation5 + $0x108] sm:$0xff]   ;;  %v1712_v43 = vld [vmem:[#allocation8] sm:$0xff]  }
  0x5e   :  { %1438 = vmatpush3.bf16.msra.mxu0 %v1673_v17  ;;  %1748 = vpow.bf16 %v98_v44  ;;  %v1713_v44 = vld [vmem:[#allocation8 + $0x8] sm:$0xff]  }
  0x5f   :  { %1439 = vmatprep.subr.bf16.mxu0 %v1676_v20  ;;  %1750 = vpow.bf16 %v101_v45  ;;  %v1692_v20 = vld [vmem:[#allocation5 + $0x150] sm:$0xff]   ;;  %v209_v45 = vsub.s32 0, %v1992_v49 }
  0x60   :  { %1460 = vmatpush3.bf16.msra.mxu1 %v1675_v19 }
  0x61   :  { %1461 = vmatprep.subr.bf16.mxu1 %v1678_v22  ;;  %v1694_v22 = vld [vmem:[#allocation5 + $0x158] sm:$0xff]   ;;  %v210_v48 = vrot.slane %v2025_v46, %v209_v45 }
  0x62   :  { %1440 = vmatpush3.bf16.msra.mxu0 %v1677_v21  ;;  %v1693_v21 = vld [vmem:[#allocation5 + $0x110] sm:$0xff]  }
  0x63   :  { %1441 = vmatprep.subr.bf16.mxu0 %v1680_v24  ;;  %v1696_v24 = vld [vmem:[#allocation5 + $0x160] sm:$0xff]  }
  0x64   :  { %1462 = vmatpush3.bf16.msra.mxu1 %v1679_v23  ;;  %v1695_v23 = vld [vmem:[#allocation5 + $0x118] sm:$0xff]  }
  0x65   :  { %1463 = vmatprep.subr.bf16.mxu1 %v1682_v26  ;;  %v1745_v51 = vpop.eup %1744  ;;  %v1698_v26 = vld [vmem:[#allocation5 + $0x168] sm:$0xff]  }
  0x66   :  { %1442 = vmatpush3.bf16.msra.mxu0 %v1681_v25  ;;  %v103_v54 = vsub.bf16 %v1745_v51, %v1892_v53  ;;  %v1697_v25 = vld [vmem:[#allocation5 + $0x120] sm:$0xff]  }
  0x67   :  { %1443 = vmatprep.subr.bf16.mxu0 %v1684_v28  ;;  %v1700_v28 = vld [vmem:[#allocation5 + $0x170] sm:$0xff]  }
  0x68   :  { %1464 = vmatpush3.bf16.msra.mxu1 %v1683_v27  ;;  %v1747_v52 = vpop.eup %1746  ;;  %v107_v59 = vsel %vm83_vm0, %v79_v31, %v103_v54  ;;  %v1699_v27 = vld [vmem:[#allocation5 + $0x128] sm:$0xff]  }
  0x69   :  { %1465 = vmatprep.subr.bf16.mxu1 %v1686_v30  ;;  %v1749_v55 = vpop.eup %1748  ;;  %v104_v56 = vsub.bf16 %v1747_v52, %v1892_v53  ;;  %v1702_v30 = vld [vmem:[#allocation5 + $0x178] sm:$0xff]  }
  0x6a   :  { %1444 = vmatpush3.bf16.msra.mxu0 %v1685_v29  ;;  %v1751_v57 = vpop.eup %1750  ;;  %v105_v58 = vsub.bf16 %v1749_v55, %v1892_v53  ;;  %v1701_v29 = vld [vmem:[#allocation5 + $0x130] sm:$0xff]  }
  0x6b   :  { %1473 = vmatprep.subr.bf16.mxu0 %v1688_v41  ;;  %v106_v61 = vsub.bf16 %v1751_v57, %v1892_v53  ;;  %v108_v62 = vsel %vm84_vm1, %v80_v32, %v104_v56  ;;  %v1703_v32 = vld [vmem:[#allocation5 + $0x138] sm:$0xff]   ;;  %v1710_v41 = vld [vmem:[#allocation7 + $0x30] sm:$0xff]  }
  0x6c   :  { %1466 = vmatpush3.bf16.msra.mxu1 %v1687_v37  ;;  %v109_v63 = vsel %vm85_vm2, %v81_v33, %v105_v58  ;;  %v215_v0 = vcombine.low %v107_v59, %v108_v62  ;;  %v216_v1 = vcombine.high %v107_v59, %v108_v62  ;;  %v1706_v37 = vld [vmem:[#allocation7 + $0x10] sm:$0xff]  }
  0x6d   :  { %v110_v2 = vsel %vm86_vm3, %v82_v34, %v106_v61  ;;  %v1704_v34 = vld [vmem:[#allocation7] sm:$0xff]   ;;  %1540 = vmatprep.subr.bf16.mxu1 %v1893_v35 }
  0x6e   :  { %v217_v3 = vcombine.low %v109_v63, %v110_v2  ;;  %v218_v4 = vcombine.high %v109_v63, %v110_v2  ;;  %v225_v5 = vrot.slane %v215_v0, %v1995_v60  ;;  %v232_v6 = vrot.slane %v216_v1, %v1995_v60 }
  0x70   :  { %v239_v7 = vrot.slane %v217_v3, %v1995_v60  ;;  %v246_v8 = vrot.slane %v218_v4, %v1995_v60 }
  0x72   :  { %v248_v9 = vcombine.high %v225_v5, %v239_v7  ;;  %v247_v10 = vcombine.low %v225_v5, %v239_v7  ;;  %v250_v12 = vcombine.high %v232_v6, %v246_v8  ;;  %v249_v31 = vcombine.low %v232_v6, %v246_v8 }
  0x74   :  { %v271_v14 = vrot.slane %v248_v9, %v1995_v60  ;;  %v257_v15 = vrot.slane %v247_v10, %v1995_v60  ;;  %v278_v19 = vrot.slane %v250_v12, %v1995_v60  ;;  %v264_v33 = vrot.slane %v249_v31, %v1995_v60  ;;  %v1714_v10 = vld [vmem:[#allocation8 + $0x10] sm:$0xff]   ;;  %v1716_v12 = vld [vmem:[#allocation8 + $0x20] sm:$0xff]  }
  0x75   :  { %v1722_v31 = vld [vmem:[#allocation8 + $0x50] sm:$0xff]  }
  0x76   :  { %607 = vmatprep.mubr.bf16.mxu0 %v271_v14  ;;  %v280_v16 = vcombine.high %v271_v14, %v271_v14  ;;  %v279_v17 = vcombine.high %v257_v15, %v257_v15  ;;  %v1718_v14 = vld [vmem:[#allocation8 + $0x30] sm:$0xff]  }
  0x77   :  { %608 = vmatmul.mubr.bf16.vlgmr.msra.gmra.mrb[0].mxu0 %v257_v15  ;;  %v1719_v15 = vld [vmem:[#allocation8 + $0x38] sm:$0xff]  }
  0x78   :  { %647 = vmatprep.mubr.bf16.mxu1 %v280_v16  ;;  %1474 = vmatpush3.bf16.msra.mxu0 %v1689_v11  ;;  %v1715_v11 = vld [vmem:[#allocation8 + $0x18] sm:$0xff]   ;;  %v1720_v16 = vld [vmem:[#allocation8 + $0x40] sm:$0xff]  }
  0x79   :  { %648 = vmatmul.mubr.bf16.vlgmr.msra.gmra.mrb[0].mxu1 %v279_v17  ;;  %1475 = vmatprep.subr.bf16.mxu0 %v1690_v13  ;;  %v1717_v13 = vld [vmem:[#allocation8 + $0x28] sm:$0xff]  }
  0x7a   :  { %687 = vmatprep.mubr.bf16.mxu0 %v278_v19  ;;  %1541 = vmatpush3.bf16.msra.mxu1 %v1704_v34  ;;  %v1721_v17 = vld [vmem:[#allocation8 + $0x48] sm:$0xff]  }
  0x7b   :  { %1542 = vmatprep.subr.bf16.mxu1 %v1893_v35  ;;  %1556 = vmatprep.mubr.msk.bf16.mxu1 %vm1894_vm4, %v1893_v35  ;;  %v1725_v34 = vld [vmem:[#allocation8 + $0x68] sm:$0xff]  }
  0x7c   :  { %1476 = vmatpush3.bf16.msra.mxu0 %v1691_v18  ;;  %v720_v18 = vsub.s32 1, %v1992_v49 }
  0x7d   :  { %1477 = vmatprep.subr.bf16.mxu0 %v1692_v20 }
  0x7e   :  { %1543 = vmatpush3.bf16.msra.mxu1 %v1705_v36  ;;  %v721_v19 = vrot.slane %v2025_v46, %v720_v18  ;;  %v1726_v36 = vld [vmem:[#allocation8 + $0x70] sm:$0xff]   ;;  %v1743_v18 = vld [vmem:[#allocation8 + $0xf8] sm:$0xff]  }
  0x7f   :  { %1544 = vmatprep.subr.bf16.mxu1 %v1893_v35 }
  0x80   :  { %1478 = vmatpush3.bf16.msra.mxu0 %v1693_v21 }
  0x81   :  { %1479 = vmatprep.subr.bf16.mxu0 %v1694_v22 }
  0x82   :  { %1545 = vmatpush3.bf16.msra.mxu1 %v1706_v37  ;;  %v1727_v37 = vld [vmem:[#allocation8 + $0x78] sm:$0xff]  }
  0x83   :  { %1546 = vmatprep.subr.bf16.mxu1 %v1893_v35 }
  0x84   :  { %1480 = vmatpush3.bf16.msra.mxu0 %v1695_v23 }
  0x85   :  { %1481 = vmatprep.subr.bf16.mxu0 %v1696_v24 }
  0x86   :  { %1547 = vmatpush3.bf16.msra.mxu1 %v1707_v38  ;;  %v1728_v38 = vld [vmem:[#allocation8 + $0x80] sm:$0xff]  }
  0x87   :  { %1548 = vmatprep.subr.bf16.mxu1 %v1893_v35 }
  0x88   :  { %1482 = vmatpush3.bf16.msra.mxu0 %v1697_v25 }
  0x89   :  { %1483 = vmatprep.subr.bf16.mxu0 %v1698_v26 }
  0x8a   :  { %1549 = vmatpush3.bf16.msra.mxu1 %v1708_v39  ;;  %v1729_v39 = vld [vmem:[#allocation8 + $0x88] sm:$0xff]  }
  0x8b   :  { %1550 = vmatprep.subr.bf16.mxu1 %v1893_v35 }
  0x8c   :  { %1484 = vmatpush3.bf16.msra.mxu0 %v1699_v27 }
  0x8d   :  { %1485 = vmatprep.subr.bf16.mxu0 %v1700_v28 }
  0x8e   :  { %1551 = vmatpush3.bf16.msra.mxu1 %v1709_v40  ;;  %v835_v40 = vsub.s32 2, %v1992_v49 }
  0x8f   :  { %1552 = vmatprep.subr.bf16.mxu1 %v1893_v35 }
  0x90   :  { %1486 = vmatpush3.bf16.msra.mxu0 %v1701_v29 }
  0x91   :  { %1487 = vmatprep.subr.bf16.mxu0 %v1702_v30 }
  0x92   :  { %1553 = vmatpush3.bf16.msra.mxu1 %v1710_v41  ;;  %v836_v41 = vrot.slane %v2025_v46, %v835_v40 }
  0x93   :  { %1554 = vmatprep.subr.bf16.mxu1 %v1893_v35 }
  0x94   :  { %1488 = vmatpush3.bf16.msra.mxu0 %v1703_v32  ;;  %v1723_v32 = vld [vmem:[#allocation8 + $0x58] sm:$0xff]  }
  0x95   :  { %1560 = vmatprep.subr.bf16.mxu0 %v1893_v35 }
  0x96   :  { %1555 = vmatpush3.bf16.msra.mxu1 %v1711_v42 }
  0x97   :  { %688 = vmatmul.mubr.bf16.vlgmr.msra.gmra.mrb[4].mxu0 %v264_v33  ;;  %1580 = vmatprep.subr.bf16.mxu1 %v1893_v35  ;;  %v1724_v33 = vld [vmem:[#allocation8 + $0x60] sm:$0xff]  }
  0x98   :  { %1576 = vmatprep.mubr.msk.bf16.mxu0 %vm1894_vm4, %v1893_v35  ;;  %1561 = vmatpush3.bf16.msra.mxu0 %v1712_v43 }
  0x99   :  { %1562 = vmatprep.subr.bf16.mxu0 %v1893_v35 }
  0x9c   :  { %1563 = vmatpush3.bf16.msra.mxu0 %v1713_v44 }
  0x9d   :  { %1564 = vmatprep.subr.bf16.mxu0 %v1893_v35 }
  0xa0   :  { %1565 = vmatpush3.bf16.msra.mxu0 %v1714_v10 }
  0xa1   :  { %1566 = vmatprep.subr.bf16.mxu0 %v1893_v35 }
  0xa4   :  { %1567 = vmatpush3.bf16.msra.mxu0 %v1715_v11 }
  0xa5   :  { %1568 = vmatprep.subr.bf16.mxu0 %v1893_v35 }
  0xa8   :  { %1569 = vmatpush3.bf16.msra.mxu0 %v1716_v12 }
  0xa9   :  { %1570 = vmatprep.subr.bf16.mxu0 %v1893_v35 }
  0xac   :  { %1571 = vmatpush3.bf16.msra.mxu0 %v1717_v13  ;;  %v1738_v13 = vld [vmem:[#allocation8 + $0xd0] sm:$0xff]  }
  0xad   :  { %1572 = vmatprep.subr.bf16.mxu0 %v1893_v35 }
  0xb0   :  { %1573 = vmatpush3.bf16.msra.mxu0 %v1718_v14  ;;  %v1739_v14 = vld [vmem:[#allocation8 + $0xd8] sm:$0xff]  }
  0xb1   :  { %1574 = vmatprep.subr.bf16.mxu0 %v1893_v35 }
  0xb4   :  { %1575 = vmatpush3.bf16.msra.mxu0 %v1719_v15  ;;  %v1740_v15 = vld [vmem:[#allocation8 + $0xe0] sm:$0xff]  }
  0xb5   :  { %1600 = vmatprep.subr.bf16.mxu0 %v1893_v35 }
 0x14a   :  { %v1445_v47 = vpop.f32.mrb[0].mxu0 }
 0x14b   :  { %v1446_v50 = vpop.f32.mrb[1].mxu0 }
 0x14c   :  { %v1447_v51 = vadd.f32 %v1446_v50, %v1445_v47  ;;  %v1448_v52 = vpop.f32.mrb[2].mxu0  ;;  %v1467_v53 = vpop.f32.mrb[0].mxu1 }
 0x14d   :  { %v1449_v54 = vpop.f32.mrb[3].mxu0  ;;  %v1468_v55 = vpop.f32.mrb[1].mxu1 }
 0x14e   :  { %v610_v56 = vadd.f32 %v1447_v51, %v210_v48  ;;  %v1469_v57 = vadd.f32 %v1468_v55, %v1467_v53  ;;  %v1470_v58 = vpop.f32.mrb[2].mxu1  ;;  %v1730_v55 = vld [vmem:[#allocation8 + $0x90] sm:$0xff]  }
 0x14f   :  { %v1471_v59 = vpop.f32.mrb[3].mxu1  ;;  %v1733_v58 = vld [vmem:[#allocation8 + $0xa8] sm:$0xff]  }
 0x150   :  { %v650_v61 = vadd.f32 %v1469_v57, %v610_v56  ;;  %v1731_v56 = vld [vmem:[#allocation8 + $0x98] sm:$0xff]   ;;  %v1732_v57 = vld [vmem:[#allocation8 + $0xa0] sm:$0xff]   ;;  %v1734_v59 = vld [vmem:[#allocation8 + $0xb0] sm:$0xff]  }
 0x16a   :  { %v1489_v62 = vpop.f32.mrb[4].mxu0 }
 0x16b   :  { %v1490_v63 = vpop.f32.mrb[5].mxu0 }
 0x16c   :  { %v1491_v0 = vadd.f32 %v1490_v63, %v1489_v62  ;;  %v1492_v1 = vpop.f32.mrb[6].mxu0  ;;  %v1736_v62 = vld [vmem:[#allocation8 + $0xc0] sm:$0xff]   ;;  %v1737_v63 = vld [vmem:[#allocation8 + $0xc8] sm:$0xff]  }
 0x16d   :  { %v1493_v2 = vpop.f32.mrb[7].mxu0 }
 0x16e   :  { %v690_v3 = vadd.f32 %v1491_v0, %v650_v61  ;;  %v1735_v61 = vld [vmem:[#allocation8 + $0xb8] sm:$0xff]   ;;  %v951_v0 = vsub.s32 3, %v1992_v49 }
 0x170   :  { %v696_v4 = vmin.f32 %v690_v3, 0.0  ;;  %vm695_vm5 = vcmp.gt.f32.partialorder %v690_v3, 0.0  ;;  %v952_v1 = vrot.slane %v2025_v46, %v951_v0 }
 0x172   :  { %v697_v5 = vmul.f32 1.442695, %v696_v4 }
 0x174   :  { %1752 = vpow2.f32 %v697_v5 }
 0x17e   :  { %v1753_v6 = vpop.eup %1752 }
 0x17f   :  { %v1381_v7 = vadd.f32 -1.0, %v1753_v6 }
 0x181   :  { %v700_v8 = vsel %vm695_vm5, %v690_v3, %v1381_v7 }
 0x182   :  { %v701_v9 = vpack.c.bf16 %v700_v8, %v700_v8 }
 0x184   :  { %1557 = vmatmul.mubr.bf16.vlgmr.msra.gmra.mrb[4].mxu1 %v701_v9 }
 0x185   :  { %1596 = vmatprep.mubr.msk.bf16.mxu1 %vm1894_vm4, %v1893_v35  ;;  %1581 = vmatpush3.bf16.msra.mxu1 %v1720_v16  ;;  %v1741_v16 = vld [vmem:[#allocation8 + $0xe8] sm:$0xff]  }
 0x186   :  { %1582 = vmatprep.subr.bf16.mxu1 %v1893_v35 }
 0x189   :  { %1583 = vmatpush3.bf16.msra.mxu1 %v1721_v17  ;;  %v1742_v17 = vld [vmem:[#allocation8 + $0xf0] sm:$0xff]  }
 0x18a   :  { %1584 = vmatprep.subr.bf16.mxu1 %v1893_v35 }
 0x18d   :  { %1585 = vmatpush3.bf16.msra.mxu1 %v1722_v31 }
 0x18e   :  { %1586 = vmatprep.subr.bf16.mxu1 %v1893_v35 }
 0x191   :  { %1587 = vmatpush3.bf16.msra.mxu1 %v1723_v32  ;;  %v1184_v32 = vsub.s32 5, %v1992_v49 }
 0x192   :  { %1588 = vmatprep.subr.bf16.mxu1 %v1893_v35 }
 0x195   :  { %1589 = vmatpush3.bf16.msra.mxu1 %v1724_v33  ;;  %v1185_v33 = vrot.slane %v2025_v46, %v1184_v32 }
 0x196   :  { %1590 = vmatprep.subr.bf16.mxu1 %v1893_v35 }
 0x199   :  { %1591 = vmatpush3.bf16.msra.mxu1 %v1725_v34 }
 0x19a   :  { %1592 = vmatprep.subr.bf16.mxu1 %v1893_v35 }
 0x19d   :  { %1593 = vmatpush3.bf16.msra.mxu1 %v1726_v36 }
 0x19e   :  { %1594 = vmatprep.subr.bf16.mxu1 %v1893_v35 }
 0x1a1   :  { %1595 = vmatpush3.bf16.msra.mxu1 %v1727_v37 }
 0x1a2   :  { %1620 = vmatprep.subr.bf16.mxu1 %v1893_v35 }
 0x257   :  { %v804_v20 = vpop.f32.mrb[4].mxu1 }
 0x258   :  { %v805_v21 = vadd.f32 %v804_v20, %v721_v19  ;;  %v1558_v22 = vpop.f32.mrb[5].mxu1  ;;  %v1067_v19 = vsub.s32 4, %v1992_v49 }
 0x259   :  { %v807_v23 = vpop.f32.mrb[6].mxu1 }
 0x25a   :  { %v811_v24 = vmin.f32 %v805_v21, 0.0  ;;  %v1559_v25 = vpop.f32.mrb[7].mxu1  ;;  %vm810_vm6 = vcmp.gt.f32.partialorder %v805_v21, 0.0  ;;  %v1068_v20 = vrot.slane %v2025_v46, %v1067_v19 }
 0x25c   :  { %v812_v26 = vmul.f32 1.442695, %v811_v24 }
 0x25e   :  { %1754 = vpow2.f32 %v812_v26 }
 0x268   :  { %v1755_v27 = vpop.eup %1754 }
 0x269   :  { %v1390_v28 = vadd.f32 -1.0, %v1755_v27 }
 0x26b   :  { %v815_v29 = vsel %vm810_vm6, %v805_v21, %v1390_v28 }
 0x26c   :  { %v816_v30 = vpack.c.bf16 %v815_v29, %v815_v29 }
 0x26e   :  { %1577 = vmatmul.mubr.bf16.vlgmr.msra.gmra.mrb[8].mxu0 %v816_v30 }
 0x26f   :  { %1616 = vmatprep.mubr.msk.bf16.mxu0 %vm1894_vm4, %v1893_v35  ;;  %1601 = vmatpush3.bf16.msra.mxu0 %v1728_v38 }
 0x270   :  { %1602 = vmatprep.subr.bf16.mxu0 %v1893_v35 }
 0x273   :  { %1603 = vmatpush3.bf16.msra.mxu0 %v1729_v39 }
 0x274   :  { %1604 = vmatprep.subr.bf16.mxu0 %v1893_v35 }
 0x277   :  { %1605 = vmatpush3.bf16.msra.mxu0 %v1730_v55 }
 0x278   :  { %1606 = vmatprep.subr.bf16.mxu0 %v1893_v35 }
 0x27b   :  { %1607 = vmatpush3.bf16.msra.mxu0 %v1731_v56 }
 0x27c   :  { %1608 = vmatprep.subr.bf16.mxu0 %v1893_v35 }
 0x27f   :  { %1609 = vmatpush3.bf16.msra.mxu0 %v1732_v57 }
 0x280   :  { %1610 = vmatprep.subr.bf16.mxu0 %v1893_v35 }
 0x283   :  { %1611 = vmatpush3.bf16.msra.mxu0 %v1733_v58 }
 0x284   :  { %1612 = vmatprep.subr.bf16.mxu0 %v1893_v35 }
 0x287   :  { %1613 = vmatpush3.bf16.msra.mxu0 %v1734_v59 }
 0x288   :  { %1614 = vmatprep.subr.bf16.mxu0 %v1893_v35 }
 0x28b   :  { %1615 = vmatpush3.bf16.msra.mxu0 %v1735_v61 }
 0x341   :  { %v919_v42 = vpop.f32.mrb[8].mxu0 }
 0x342   :  { %v920_v43 = vadd.f32 %v919_v42, %v836_v41  ;;  %v1578_v44 = vpop.f32.mrb[9].mxu0 }
 0x343   :  { %v922_v45 = vpop.f32.mrb[10].mxu0 }
 0x344   :  { %v926_v47 = vmin.f32 %v920_v43, 0.0  ;;  %v1579_v48 = vpop.f32.mrb[11].mxu0  ;;  %vm925_vm7 = vcmp.gt.f32.partialorder %v920_v43, 0.0 }
 0x346   :  { %v927_v50 = vmul.f32 1.442695, %v926_v47 }
 0x348   :  { %1756 = vpow2.f32 %v927_v50 }
 0x352   :  { %v1757_v51 = vpop.eup %1756 }
 0x353   :  { %v1399_v52 = vadd.f32 -1.0, %v1757_v51 }
 0x355   :  { %v2052_v53 = vsel %vm925_vm7, %v920_v43, %v1399_v52 }
 0x356   :  { %v931_v54 = vpack.c.bf16 %v2052_v53, %v2052_v53 }
 0x358   :  { %1597 = vmatmul.mubr.bf16.vlgmr.msra.gmra.mrb[8].mxu1 %v931_v54 }
 0x359   :  { %1636 = vmatprep.mubr.msk.bf16.mxu1 %vm1894_vm4, %v1893_v35  ;;  %1621 = vmatpush3.bf16.msra.mxu1 %v1736_v62 }
 0x35a   :  { %1622 = vmatprep.subr.bf16.mxu1 %v1893_v35 }
 0x35d   :  { %1623 = vmatpush3.bf16.msra.mxu1 %v1737_v63 }
 0x35e   :  { %1624 = vmatprep.subr.bf16.mxu1 %v1893_v35 }
 0x361   :  { %1625 = vmatpush3.bf16.msra.mxu1 %v1738_v13 }
 0x362   :  { %1626 = vmatprep.subr.bf16.mxu1 %v1893_v35 }
 0x365   :  { %1627 = vmatpush3.bf16.msra.mxu1 %v1739_v14 }
 0x366   :  { %1628 = vmatprep.subr.bf16.mxu1 %v1893_v35 }
 0x369   :  { %1629 = vmatpush3.bf16.msra.mxu1 %v1740_v15 }
 0x36a   :  { %1630 = vmatprep.subr.bf16.mxu1 %v1893_v35 }
 0x36d   :  { %1631 = vmatpush3.bf16.msra.mxu1 %v1741_v16 }
 0x36e   :  { %1632 = vmatprep.subr.bf16.mxu1 %v1893_v35 }
 0x371   :  { %1633 = vmatpush3.bf16.msra.mxu1 %v1742_v17 }
 0x372   :  { %1634 = vmatprep.subr.bf16.mxu1 %v1893_v35 }
 0x375   :  { %1635 = vmatpush3.bf16.msra.mxu1 %v1743_v18 }
 0x42b   :  { %v1035_v2 = vpop.f32.mrb[8].mxu1 }
 0x42c   :  { %v1036_v3 = vadd.f32 %v1035_v2, %v952_v1  ;;  %v1598_v4 = vpop.f32.mrb[9].mxu1 }
 0x42d   :  { %v1038_v5 = vpop.f32.mrb[10].mxu1 }
 0x42e   :  { %v1042_v6 = vmin.f32 %v1036_v3, 0.0  ;;  %v1599_v7 = vpop.f32.mrb[11].mxu1  ;;  %vm1041_vm8 = vcmp.gt.f32.partialorder %v1036_v3, 0.0 }
 0x430   :  { %v1043_v8 = vmul.f32 1.442695, %v1042_v6 }
 0x432   :  { %1758 = vpow2.f32 %v1043_v8 }
 0x43c   :  { %v1759_v9 = vpop.eup %1758 }
 0x43d   :  { %v1408_v10 = vadd.f32 -1.0, %v1759_v9 }
 0x43f   :  { %v1046_v11 = vsel %vm1041_vm8, %v1036_v3, %v1408_v10 }
 0x440   :  { %v1047_v12 = vpack.c.bf16 %v1046_v11, %v1046_v11 }
 0x442   :  { %1617 = vmatmul.mubr.bf16.vlgmr.msra.gmra.mrb[12].mxu0 %v1047_v12 }
 0x515   :  { %v1151_v21 = vpop.f32.mrb[12].mxu0 }
 0x516   :  { %v1152_v22 = vadd.f32 %v1151_v21, %v1068_v20  ;;  %v1618_v23 = vpop.f32.mrb[13].mxu0 }
 0x517   :  { %v1154_v24 = vpop.f32.mrb[14].mxu0 }
 0x518   :  { %v1158_v25 = vmin.f32 %v1152_v22, 0.0  ;;  %v1619_v26 = vpop.f32.mrb[15].mxu0  ;;  %vm1157_vm9 = vcmp.gt.f32.partialorder %v1152_v22, 0.0 }
 0x51a   :  { %v1159_v27 = vmul.f32 1.442695, %v1158_v25 }
 0x51c   :  { %1760 = vpow2.f32 %v1159_v27 }
 0x526   :  { %v1761_v28 = vpop.eup %1760 }
 0x527   :  { %v1417_v29 = vadd.f32 -1.0, %v1761_v28 }
 0x529   :  { %v1162_v30 = vsel %vm1157_vm9, %v1152_v22, %v1417_v29 }
 0x52a   :  { %v1163_v35 = vadd.f32 %v1162_v30, %v2052_v53 }
 0x52c   :  { %v1164_v31 = vpack.c.bf16 %v1163_v35, %v1163_v35 }
 0x52e   :  { %1637 = vmatmul.mubr.bf16.vlgmr.msra.gmra.mrb[12].mxu1 %v1164_v31 }
 0x601   :  { %v1268_v34 = vpop.f32.mrb[12].mxu1 }
 0x602   :  { %v1269_v36 = vadd.f32 %v1268_v34, %v1185_v33  ;;  %v1638_v37 = vpop.f32.mrb[13].mxu1 }
 0x603   :  { %v1271_v38 = vpop.f32.mrb[14].mxu1 }
 0x604   :  { %v1275_v39 = vmin.f32 %v1269_v36, 0.0  ;;  %v1639_v40 = vpop.f32.mrb[15].mxu1  ;;  %vm1274_vm10 = vcmp.gt.f32.partialorder %v1269_v36, 0.0 }
 0x606   :  { %v1276_v41 = vmul.f32 1.442695, %v1275_v39 }
 0x608   :  { %1762 = vpow2.f32 %v1276_v41 }
 0x612   :  { %v1763_v42 = vpop.eup %1762 }
 0x613   :  { %v1426_v43 = vadd.f32 -1.0, %v1763_v42 }
 0x615   :  { %v1279_v44 = vsel %vm1274_vm10, %v1269_v36, %v1426_v43 }
 0x616   :  { %v1280_v45 = vpack.c.bf16 %v1279_v44, %v1279_v44 }
 0x618   :  { %v1288_v47 = vrot.slane %v1280_v45, %v1995_v60 }
 0x61a   :  { %v1289_v48 = vcombine.high %v1288_v47, %v1288_v47  ;;  %v1296_v49 = vrot.slane %v1288_v47, %v1995_v60  ;;  %1427 = vst.sshfl [vmem:[#allocation10] sm:$0x1 pattern:$0x73625140] %v1288_v47 }
 0x61c   :  { %v1303_v46 = vrot.slane %v1289_v48, %v1995_v60  ;;  %v1304_v50 = vcombine.high %v1296_v49, %v1296_v49  ;;  %1428 = vst.sshfl [vmem:[#allocation10 + $0x1] sm:$0x1 pattern:$0x73625140] %v1289_v48 }
 0x61e   :  { %v1305_v51 = vcombine.high %v1303_v46, %v1303_v46  ;;  %1312 = vst [vmem:[#allocation10 + $0x2] sm:$0x1] %v1304_v50 }
 0x620   :  { %1313 = vst [vmem:[#allocation10 + $0x3] sm:$0x1] %v1305_v51 }
 0x621   :  { %1318 = vsyncadd [#allocation4], 48  ;;  %s1895_s4 = smov [#allocation10]  }
 0x622   :  { %s1319_s29 = sshll.u32 %s1895_s4, 4  ;;  %s1320_s29 = int_to_ptr.vmem [resolvable:$true] %s1319_s29 }
 0x623   :  { %s1852_s19 = scalar_lea.vmem %s1320_s29, 16  ;;  %s1856_s20 = scalar_lea.vmem %s1320_s29, 64 }
 0x624   :  { %p1853_p4 = scmp.ne.s32.totalorder %s1320_s29, %s1852_s19  ;;  %p1857_p5 = scmp.lt.s32.totalorder %s1320_s29, %s1320_s29 }
 0x625   :  { %p1858_p6 = scmp.lt.s32.totalorder %s1856_s20, %s1852_s19 }
 0x627   :  { %p1859_p7 = por %p1858_p6, %p1857_p5 }
 0x629   :  { %p1860_p8 = pnand %p1859_p7, %p1853_p4 }
 0x62b   :  { %1863 = shalt.err (!%p1860_p8)
}
 0x62c   :  { %s1864_s23 = scalar_lea.hbm %s2097_s5, 16 }
 0x62d   :  { %p1865_p9 = scmp.ne.s32.totalorder %s2097_s5, %s1864_s23  ;;  %p1868_p10 = scmp.lt.u32.totalorder %s1864_s23, %s2097_s5 }
 0x62f   :  { %p1870_p11 = pnand %p1868_p10, %p1865_p9 }
 0x631   :  { %1873 = shalt.err (!%p1870_p11)
}
 0x632   :  { %s1896_s30 = smov 16   ;;  %s1897_s6 = smov 1  }
 0x633   :  { %1325 = dma.vmem_to_hbm [thread:$0]  %s1320_s29, 16, %s2097_s5, [#allocation4], %s1896_s30, %s1896_s30, %s1897_s6  }
 0x634   :  { %1880 = dma.done.wait [#allocation4], 64  }
 0x635   :  { %1881 = vsyncadd [#allocation4], 4294967232 }
 0x636   :  { %1329 = vsyncpa [#allocation3], 1 }
 0x637   :  { %1330 = vsyncpa [#allocation6], 1 }
 0x638   :  { %1331 = vsyncpa [#allocation9], 1 }
 0x639   :  { %1332 = vsyncpa [#allocation4], 1 }

</bundles_post_ra>
